<compile_context>
chip_gen: v6e
topology: v6e:2x2x1
jax: 0.10.0
libtpu: 0.0.40
codegen_flags: <defaults>
</compile_context>

<pallas_src>
import math

import jax
import jax.numpy as jnp
from jax.experimental import pallas as pl
from jax.experimental.pallas import tpu as pltpu

M_ORDER = 4          # the module's default m=4
PI = 3.14159265      # constant used by the PyTorch module (truncated on purpose)

# k = floor(M * arccos(c) / PI) == #{ m in {1..4} : c <= cos(m*PI/4) } for c in [-1, 1]
_T1 = math.cos(1.0 * PI / M_ORDER)   # ~ +0.7071068
_T2 = math.cos(2.0 * PI / M_ORDER)   # ~ +1.8e-9 (PI is truncated, not exactly 0)
_T3 = math.cos(3.0 * PI / M_ORDER)   # ~ -0.7071068
_T4 = -1.0                           # cos(PI) rounds to -1; c is clamped to >= -1


def angle_linear_kernel(xn_ref, xlen_ref, w_ref, wscale_ref, cos_ref, phi_ref):
    x_n = xn_ref[...]          # (tb, D)  row-normalized x, f32 or bf16
    xlen = xlen_ref[...]       # (tb, 1)  f32 row norms
    w = w_ref[...]             # (D, tc)  raw weight tile, f32 or bf16 (resident across batch sweep)
    w_scale = wscale_ref[...]  # (1, tc)  f32 combined column scale == renorm / wlen

    # MXU: x is already row-normalized, so dot * w_scale is cos(theta) directly.
    dot = jnp.dot(x_n, w, preferred_element_type=jnp.float32)
    cos_theta = jnp.clip(dot * w_scale, -1.0, 1.0)

    # cos(4*theta) Chebyshev polynomial: 8c^4 - 8c^2 + 1.
    c2 = cos_theta * cos_theta
    cos_m_theta = 8.0 * c2 * c2 - 8.0 * c2 + 1.0

    # k and (-1)^k via VPU compares -- no arccos / floor / pow on the output tile.
    b1 = cos_theta <= _T1
    b2 = cos_theta <= _T2
    b3 = cos_theta <= _T3
    b4 = cos_theta <= _T4
    k = (b1.astype(jnp.float32) + b2.astype(jnp.float32)
         + b3.astype(jnp.float32) + b4.astype(jnp.float32))
    odd = jnp.logical_xor(jnp.logical_xor(b1, b2), jnp.logical_xor(b3, b4))
    sign = jnp.where(odd, -1.0, 1.0)
    phi_theta = sign * cos_m_theta - 2.0 * k

    cos_ref[...] = (cos_theta * xlen).astype(cos_ref.dtype)
    phi_ref[...] = (phi_theta * xlen).astype(phi_ref.dtype)


def _round_up(a, b):
    return ((a + b - 1) // b) * b


def _choose_tiles(B, D, C, wbytes, out_bytes, tb, tc):
    """Lane-dense tiles sized from an explicit VMEM working-set budget."""
    if tb is None:
        tb = min(_round_up(B, 8), 256)
    if tc is None:
        # Working-set target ~40 MiB: safe inside v7x's 64 MiB per-TC VMEM and far
        # below v5e/v6e's 128 MiB physical.  Accounts for double-buffered weight,
        # double-buffered x_n / xlen, and 2 outputs x 2 buffers.
        budget = 40 * 1024 * 1024
        fixed = 2 * tb * D * wbytes + 2 * tb * 128 * 4          # x_n + xlen (lane-padded)
        per_tc = 2 * D * wbytes + 4 * tb * out_bytes + 2 * 8 * 4  # weight + outputs + w_scale
        tc = max(128, ((max(budget - fixed, 0) // per_tc) // 128) * 128)
    tc = min(tc, _round_up(C, 128))
    return tb, tc


def prepare_angle_weight(weight, *, tc, weight_dtype=jnp.float32):
    """Compute the fused per-column scale and the padded / cast streaming weight.

    For static (inference) weights call this ONCE and reuse the result; running it
    per step re-reads the full D x C array outside the kernel.
    """
    D, C = weight.shape
    w = weight.astype(jnp.float32)
    col_norm = jnp.sqrt(jnp.sum(w * w, axis=0, keepdims=True))               # (1, C)
    renorm = jnp.where(col_norm > 1e-5, 1e-5 / (col_norm + 1e-7), 1.0) * 1e5
    wlen = col_norm * renorm                                                 # == ||ww||_col
    w_scale = renorm / jnp.maximum(wlen, 1e-30)                              # guard zero columns
    Cp = _round_up(C, tc)
    w_p = jnp.pad(w, ((0, 0), (0, Cp - C))).astype(weight_dtype)             # stream dtype chosen once
    ws_p = jnp.pad(w_scale, ((0, 0), (0, Cp - C)))                           # padded cols -> scale 0
    return w_p, ws_p


def angle_linear(x, weight, *, tb=None, tc=None, use_bf16=False, out_dtype=jnp.float32):
    """x: (B, in_features), weight: (in_features, out_features).
    Returns (cos_theta, phi_theta), each (B, out_features) in out_dtype."""
    B, D = x.shape
    D2, C = weight.shape
    assert D == D2

    weight_dtype = jnp.bfloat16 if use_bf16 else jnp.float32
    wbytes = 2 if use_bf16 else 4
    out_bytes = jnp.dtype(out_dtype).itemsize
    tb, tc = _choose_tiles(B, D, C, wbytes, out_bytes, tb, tc)

    # TODO(synk): for static (inference) weights, hoist prepare_angle_weight out of
    # the per-call path so the full DxC cast/pad/reduce runs once, not every call.
    w_p, ws_p = prepare_angle_weight(weight, tc=tc, weight_dtype=weight_dtype)
    Cp = w_p.shape[1]

    # Row norms hoisted out of the kernel.  Pad extra rows with 1s so they stay finite.
    Bp = _round_up(B, tb)
    x_f = jnp.pad(x.astype(jnp.float32), ((0, Bp - B), (0, 0)), constant_values=1.0)
    xlen_sq = jnp.sum(x_f * x_f, axis=1, keepdims=True)                      # (Bp, 1)
    xlen = jnp.sqrt(xlen_sq)
    x_n = (x_f * jax.lax.rsqrt(xlen_sq)).astype(weight_dtype)                # row-normalized LHS

    n_ct = Cp // tc
    n_bt = Bp // tb
    grid = (n_ct, n_bt)  # class tiles OUTER: weight tile stays resident across the batch sweep

    # Explicit VMEM limit sized from the actual working set (+ generous headroom),
    # kept under v7x's 64 MiB per-TC VMEM.
    footprint = (2 * D * tc * wbytes          # weight, double-buffered
                 + 2 * tb * D * wbytes        # x_n, double-buffered
                 + 2 * tb * 128 * 4           # xlen (lane-padded)
                 + 2 * 8 * tc * 4             # w_scale (sublane-padded)
                 + 4 * tb * tc * out_bytes)   # 2 outputs x 2 buffers
    vmem_limit = int(min(max(footprint * 3 // 2 + (4 << 20), 32 << 20), 56 << 20))

    cos_p, phi_p = pl.pallas_call(
        angle_linear_kernel,
        out_shape=(jax.ShapeDtypeStruct((Bp, Cp), out_dtype),
                   jax.ShapeDtypeStruct((Bp, Cp), out_dtype)),
        grid=grid,
        in_specs=[
            pl.BlockSpec((tb, D), lambda j, i: (i, 0)),   # x_n tile: streams on inner axis
            pl.BlockSpec((tb, 1), lambda j, i: (i, 0)),   # row norms
            pl.BlockSpec((D, tc), lambda j, i: (0, j)),   # weight: changes only on outer axis
            pl.BlockSpec((1, tc), lambda j, i: (0, j)),   # combined column scale
        ],
        out_specs=(
            pl.BlockSpec((tb, tc), lambda j, i: (i, j)),
            pl.BlockSpec((tb, tc), lambda j, i: (i, j)),
        ),
        compiler_params=pltpu.CompilerParams(
            dimension_semantics=("parallel", "arbitrary"),   # megacore shards the class axis
            vmem_limit_bytes=vmem_limit),
    )(x_n, xlen, w_p, ws_p)

    return cos_p[:B, :C], phi_p[:B, :C]


def _reference(x, weight):
    """Pure-JAX transcription of the PyTorch forward (m=4)."""
    w = weight
    col_norm = jnp.sqrt(jnp.sum(w * w, axis=0, keepdims=True))
    scale = jnp.where(col_norm > 1e-5, 1e-5 / (col_norm + 1e-7), 1.0) * 1e5
    ww = w * scale
    xlen = jnp.sqrt(jnp.sum(x * x, axis=1, keepdims=True))
    wlen = jnp.sqrt(jnp.sum(ww * ww, axis=0, keepdims=True))
    cos_theta = jnp.dot(x, ww, precision=jax.lax.Precision.HIGHEST)
    cos_theta = jnp.clip(cos_theta / xlen / wlen, -1.0, 1.0)
    cos_m_theta = 8.0 * cos_theta ** 4 - 8.0 * cos_theta ** 2 + 1.0
    theta = jnp.arccos(cos_theta)
    k = jnp.floor(M_ORDER * theta / PI)
    sign = 1.0 - 2.0 * jnp.mod(k, 2.0)
    phi_theta = sign * cos_m_theta - 2.0 * k
    return cos_theta * xlen, phi_theta * xlen


if __name__ == "__main__":
    in_features, out_features, batch = 64, 256, 16   # small demo shapes

    key = jax.random.PRNGKey(0)
    kx, kw = jax.random.split(key)

    # Parameter init mirroring __init__: uniform(-1, 1) of shape (in, out). (The
    # renorm*1e5 from __init__ is re-applied in forward, so raw uniform is fine.)
    weight = jax.random.uniform(
        kw, (in_features, out_features), jnp.float32, minval=-1.0, maxval=1.0
    )
    x = jax.random.normal(kx, (batch, in_features), jnp.float32)

    cos_theta, phi_theta = angle_linear(x, weight)
    jax.block_until_ready((cos_theta, phi_theta))

    assert cos_theta.shape == (batch, out_features)
    assert phi_theta.shape == (batch, out_features)
    assert bool(jnp.all(jnp.isfinite(cos_theta)))
    assert bool(jnp.all(jnp.isfinite(phi_theta)))

    # Numerical smoke-check against the pure-JAX reference (generous tolerances:
    # matmul precision / op-reassociation differ slightly; phi may additionally
    # differ by a discrete 2k jump for values within float rounding of a
    # k-interval boundary, so require near-total agreement there).
    cos_ref, phi_ref = _reference(x, weight)
    assert bool(jnp.allclose(cos_theta, cos_ref, rtol=1e-2, atol=1e-1))
    match = jnp.isclose(phi_theta, phi_ref, rtol=1e-2, atol=1e-1)
    assert float(jnp.mean(match.astype(jnp.float32))) >= 0.999

    print("KERNEL_OK")
</pallas_src>

<mosaic_0001>
module attributes {stable_mosaic.version = 11 : i64} {
  func.func @angle_linear_kernel(%arg0: i32, %arg1: i32, %arg2: memref<16x64xf32, #tpu.memory_space<vmem>>, %arg3: memref<16x1xf32, #tpu.memory_space<vmem>>, %arg4: memref<64x256xf32, #tpu.memory_space<vmem>>, %arg5: memref<1x256xf32, #tpu.memory_space<vmem>>, %arg6: memref<16x256xf32, #tpu.memory_space<vmem>>, %arg7: memref<16x256xf32, #tpu.memory_space<vmem>>) attributes {dimension_semantics = [#tpu.dimension_semantics<parallel>, #tpu.dimension_semantics<arbitrary>], iteration_bounds = array<i64: 1, 1>, scalar_prefetch = 0 : i64, scratch_operands = 0 : i64, tpu.core_type = #tpu.core_type<tc>, window_params = [{transform_indices = @transform_0, window_bounds = array<i64: 16, 64>}, {transform_indices = @transform_1, window_bounds = array<i64: 16, 1>}, {transform_indices = @transform_2, window_bounds = array<i64: 64, 256>}, {transform_indices = @transform_3, window_bounds = array<i64: 1, 256>}, {transform_indices = @transform_4, window_bounds = array<i64: 16, 256>}, {transform_indices = @transform_5, window_bounds = array<i64: 16, 256>}]} {
    %c0 = arith.constant 0 : index
    %c0_0 = arith.constant 0 : index
    %0 = vector.load %arg2[%c0, %c0_0] : memref<16x64xf32, #tpu.memory_space<vmem>>, vector<16x64xf32>
    %c0_1 = arith.constant 0 : index
    %c0_2 = arith.constant 0 : index
    %1 = vector.load %arg3[%c0_1, %c0_2] : memref<16x1xf32, #tpu.memory_space<vmem>>, vector<16x1xf32>
    %c0_3 = arith.constant 0 : index
    %c0_4 = arith.constant 0 : index
    %2 = vector.load %arg4[%c0_3, %c0_4] : memref<64x256xf32, #tpu.memory_space<vmem>>, vector<64x256xf32>
    %c0_5 = arith.constant 0 : index
    %c0_6 = arith.constant 0 : index
    %3 = vector.load %arg5[%c0_5, %c0_6] : memref<1x256xf32, #tpu.memory_space<vmem>>, vector<1x256xf32>
    %cst = arith.constant dense<0.000000e+00> : vector<16x256xf32>
    %4 = tpu.matmul %0, %2, %cst {dimension_numbers = #tpu.dot_dimension_numbers<[1], [0], [0], [1], [0, 0, 1, 1], [], []>} : vector<16x64xf32>, vector<64x256xf32>, vector<16x256xf32> -> vector<16x256xf32>
    %5 = vector.broadcast %3 : vector<1x256xf32> to vector<16x256xf32>
    %6 = arith.mulf %4, %5 : vector<16x256xf32>
    %cst_7 = arith.constant -1.000000e+00 : f32
    %cst_8 = arith.constant 1.000000e+00 : f32
    %7 = vector.broadcast %cst_7 : f32 to vector<16x256xf32>
    %8 = arith.maximumf %7, %6 : vector<16x256xf32>
    %9 = vector.broadcast %cst_8 : f32 to vector<16x256xf32>
    %10 = arith.minimumf %9, %8 : vector<16x256xf32>
    %11 = arith.mulf %10, %10 : vector<16x256xf32>
    %cst_9 = arith.constant 8.000000e+00 : f32
    %12 = vector.broadcast %cst_9 : f32 to vector<16x256xf32>
    %13 = arith.mulf %12, %11 : vector<16x256xf32>
    %14 = arith.mulf %13, %11 : vector<16x256xf32>
    %cst_10 = arith.constant 8.000000e+00 : f32
    %15 = vector.broadcast %cst_10 : f32 to vector<16x256xf32>
    %16 = arith.mulf %15, %11 : vector<16x256xf32>
    %17 = arith.subf %14, %16 : vector<16x256xf32>
    %cst_11 = arith.constant 1.000000e+00 : f32
    %18 = vector.broadcast %cst_11 : f32 to vector<16x256xf32>
    %19 = arith.addf %17, %18 : vector<16x256xf32>
    %cst_12 = arith.constant 0.707106769 : f32
    %20 = vector.broadcast %cst_12 : f32 to vector<16x256xf32>
    %21 = arith.cmpf ole, %10, %20 : vector<16x256xf32>
    %cst_13 = arith.constant 1.79489656E-9 : f32
    %22 = vector.broadcast %cst_13 : f32 to vector<16x256xf32>
    %23 = arith.cmpf ole, %10, %22 : vector<16x256xf32>
    %cst_14 = arith.constant -0.707106769 : f32
    %24 = vector.broadcast %cst_14 : f32 to vector<16x256xf32>
    %25 = arith.cmpf ole, %10, %24 : vector<16x256xf32>
    %cst_15 = arith.constant -1.000000e+00 : f32
    %26 = vector.broadcast %cst_15 : f32 to vector<16x256xf32>
    %27 = arith.cmpf ole, %10, %26 : vector<16x256xf32>
    %28 = arith.extui %21 : vector<16x256xi1> to vector<16x256xi32>
    %29 = arith.sitofp %28 : vector<16x256xi32> to vector<16x256xf32>
    %30 = arith.extui %23 : vector<16x256xi1> to vector<16x256xi32>
    %31 = arith.sitofp %30 : vector<16x256xi32> to vector<16x256xf32>
    %32 = arith.addf %29, %31 : vector<16x256xf32>
    %33 = arith.extui %25 : vector<16x256xi1> to vector<16x256xi32>
    %34 = arith.sitofp %33 : vector<16x256xi32> to vector<16x256xf32>
    %35 = arith.addf %32, %34 : vector<16x256xf32>
    %36 = arith.extui %27 : vector<16x256xi1> to vector<16x256xi32>
    %37 = arith.sitofp %36 : vector<16x256xi32> to vector<16x256xf32>
    %38 = arith.addf %35, %37 : vector<16x256xf32>
    %39 = arith.xori %21, %23 : vector<16x256xi1>
    %40 = arith.xori %25, %27 : vector<16x256xi1>
    %41 = arith.xori %39, %40 : vector<16x256xi1>
    %cst_16 = arith.constant -1.000000e+00 : f32
    %cst_17 = arith.constant 1.000000e+00 : f32
    %42 = vector.broadcast %cst_16 : f32 to vector<16x256xf32>
    %43 = vector.broadcast %cst_17 : f32 to vector<16x256xf32>
    %44 = arith.select %41, %42, %43 : vector<16x256xi1>, vector<16x256xf32>
    %45 = arith.mulf %44, %19 : vector<16x256xf32>
    %cst_18 = arith.constant 2.000000e+00 : f32
    %46 = vector.broadcast %cst_18 : f32 to vector<16x256xf32>
    %47 = arith.mulf %46, %38 : vector<16x256xf32>
    %48 = arith.subf %45, %47 : vector<16x256xf32>
    %49 = vector.broadcast %1 : vector<16x1xf32> to vector<16x256xf32>
    %50 = arith.mulf %10, %49 : vector<16x256xf32>
    %c0_19 = arith.constant 0 : index
    %c0_20 = arith.constant 0 : index
    %51 = vector.load %arg6[%c0_19, %c0_20] : memref<16x256xf32, #tpu.memory_space<vmem>>, vector<16x256xf32>
    tpu.vector_store %arg6[%c0_19, %c0_20], %50 {strides = array<i32>} : memref<16x256xf32, #tpu.memory_space<vmem>>, vector<16x256xf32>,
    %52 = vector.broadcast %1 : vector<16x1xf32> to vector<16x256xf32>
    %53 = arith.mulf %48, %52 : vector<16x256xf32>
    %c0_21 = arith.constant 0 : index
    %c0_22 = arith.constant 0 : index
    %54 = vector.load %arg7[%c0_21, %c0_22] : memref<16x256xf32, #tpu.memory_space<vmem>>, vector<16x256xf32>
    tpu.vector_store %arg7[%c0_21, %c0_22], %53 {strides = array<i32>} : memref<16x256xf32, #tpu.memory_space<vmem>>, vector<16x256xf32>,
    return
  }
  func.func @transform_0(%arg0: i32, %arg1: i32) -> (i32, i32) {
    %c0_i32 = arith.constant 0 : i32
    %c0_i32_0 = arith.constant 0 : i32
    return %arg1, %c0_i32 : i32, i32
  }
  func.func @transform_1(%arg0: i32, %arg1: i32) -> (i32, i32) {
    %c0_i32 = arith.constant 0 : i32
    %c0_i32_0 = arith.constant 0 : i32
    return %arg1, %c0_i32 : i32, i32
  }
  func.func @transform_2(%arg0: i32, %arg1: i32) -> (i32, i32) {
    %c0_i32 = arith.constant 0 : i32
    %c0_i32_0 = arith.constant 0 : i32
    return %c0_i32, %arg0 : i32, i32
  }
  func.func @transform_3(%arg0: i32, %arg1: i32) -> (i32, i32) {
    %c0_i32 = arith.constant 0 : i32
    %c0_i32_0 = arith.constant 0 : i32
    return %c0_i32, %arg0 : i32, i32
  }
  func.func @transform_4(%arg0: i32, %arg1: i32) -> (i32, i32) {
    %c0_i32 = arith.constant 0 : i32
    return %arg1, %arg0 : i32, i32
  }
  func.func @transform_5(%arg0: i32, %arg1: i32) -> (i32, i32) {
    %c0_i32 = arith.constant 0 : i32
    return %arg1, %arg0 : i32, i32
  }
}

</mosaic_0001>

<bundles_post_ra>
// kernel: tpu_custom_call.1
= control target key start
LH: loop header
LB: loop body
LE: loop exit
PB: predicated region body
PF: predicated region fallthrough
CT: control target
= control target key end

     0   :  { %11 = vsyncpa [#allocation3], 0  ;;  %s662_s0 = inlined_call_operand.vmem [shape: f32[16,64], index: 0, kind: input, shape index: {}]   ;;  %s663_s1 = inlined_call_operand.vmem [shape: f32[16,1], index: 1, kind: input, shape index: {}]   ;;  %s664_s2 = inlined_call_operand.hbm [shape: f32[64,256], index: 2, kind: input, shape index: {}]   ;;  %s665_s3 = inlined_call_operand.vmem [shape: f32[1,256], index: 3, kind: input, shape index: {}]   ;;  %s666_s4 = inlined_call_operand.hbm [shape: f32[16,256], index: 4, kind: output, shape index: {0}]   ;;  %s667_s5 = inlined_call_operand.hbm [shape: f32[16,256], index: 5, kind: output, shape index: {1}]  }
   0x1   :  { %12 = vsyncpa [#allocation4], 0 }
   0x2   :  { %13 = vsyncpa [#allocation7], 0  ;;  %s443_s18 = smov [#allocation2]  }
   0x3   :  { %s23_s19 = sshll.u32 %s443_s18, 4  ;;  %s24_s19 = int_to_ptr.vmem [resolvable:$true] %s23_s19 }
   0x4   :  { %s385_s20 = scalar_lea.vmem %s24_s19, 2048  ;;  %p390_p1 = scmp.lt.s32.totalorder %s24_s19, %s24_s19 }
   0x5   :  { %p386_p0 = scmp.ne.s32.totalorder %s24_s19, %s385_s20  ;;  %p391_p2 = scmp.lt.s32.totalorder %s385_s20, %s385_s20 }
   0x7   :  { %p392_p3 = por %p391_p2, %p390_p1 }
   0x9   :  { %p393_p4 = pnand %p392_p3, %p386_p0 }
   0xb   :  { %396 = shalt.err (!%p393_p4)
}
   0xc   :  { %s444_s21 = smov 256   ;;  %s445_s22 = smov 16  }
   0xd   :  { %29 = dma.hbm_to_vmem [thread:$0]  %s664_s2, 2048, %s24_s19, [#allocation3], %s444_s21, %s444_s21, %s445_s22  }
   0xe   :  { %437 = dma.done.wait [#allocation3], 2048  }
   0xf   :  { %438 = vsyncadd [#allocation3], 4294965248  ;;  %v446_v0 = vmov 0.0   ;;  %v447_v1 = vmov 0   ;;  %v54_v2 = vld [vmem:[#allocation2 + $0x78] sm:$0xff]  ;;  %v53_v3 = vld [vmem:[#allocation2 + $0x70] sm:$0xff]  ;;  %v141_v22 = vlaneseq }
  0x10   :  { %127 = vmatprep.mubr.f32.mxu0 %v446_v0  ;;  %133 = vmatprep.mubr.f32.mxu1 %v446_v0  ;;  %v52_v4 = vld [vmem:[#allocation2 + $0x68] sm:$0xff]  ;;  %v51_v5 = vld [vmem:[#allocation2 + $0x60] sm:$0xff]  ;;  %v50_v6 = vld [vmem:[#allocation2 + $0x58] sm:$0xff]  ;;  %vm56_vm0 = vcmask 523264  }
  0x11   :  { %376 = vset.pattern.permute.xlu0 %v447_v1  ;;  %79 = vmatprep.subr.mxu0 %v54_v2  ;;  %v49_v7 = vld [vmem:[#allocation2 + $0x50] sm:$0xff]  ;;  %v48_v8 = vld [vmem:[#allocation2 + $0x48] sm:$0xff]  ;;  %v47_v9 = vld [vmem:[#allocation2 + $0x40] sm:$0xff]  ;;  %v142_v23 = vshrl.u32 %v141_v22, 7 }
  0x12   :  { %352 = vmatprep.subr.mxu1 %v54_v2  ;;  %80 = vmatpush1.msra.mxu0 %v53_v3  ;;  %v46_v10 = vld [vmem:[#allocation2 + $0x38] sm:$0xff]  ;;  %v45_v11 = vld [vmem:[#allocation2 + $0x30] sm:$0xff]  ;;  %v44_v12 = vld [vmem:[#allocation2 + $0x28] sm:$0xff] }
  0x13   :  { %360 = vmatpush1.msra.mxu1 %v53_v3  ;;  %81 = vmatprep.subr.mxu0 %v52_v4  ;;  %v43_v13 = vld [vmem:[#allocation2 + $0x20] sm:$0xff]  ;;  %v42_v14 = vld [vmem:[#allocation2 + $0x18] sm:$0xff]  ;;  %v41_v15 = vld [vmem:[#allocation2 + $0x10] sm:$0xff]  ;;  %v143_v24 = vsub.s32 0, %v142_v23  ;;  %v147_v26 = vsub.s32 1, %v142_v23 }
  0x14   :  { %353 = vmatprep.subr.mxu1 %v52_v4  ;;  %82 = vmatpush1.msra.mxu0 %v51_v5  ;;  %v40_v16 = vld [vmem:[#allocation2 + $0x8] sm:$0xff]  ;;  %v39_v17 = vld [vmem:[#allocation2] sm:$0xff] }
  0x15   :  { %361 = vmatpush1.msra.mxu1 %v51_v5  ;;  %83 = vmatprep.subr.mxu0 %v50_v6  ;;  %v35_v18 = vld [vmem:[%s662_s0] sm:$0xff]  ;;  %v36_v19 = vld [vmem:[%s662_s0 + $0x8] sm:$0xff] }
  0x16   :  { %354 = vmatprep.subr.mxu1 %v50_v6  ;;  %84 = vmatpush1.msra.mxu0 %v49_v7  ;;  %v37_v20 = vld [vmem:[%s663_s1] sm:$0xff]  ;;  %v38_v21 = vld [vmem:[%s663_s1 + $0x8] sm:$0xff]  ;;  %s448_s1 = smov [#allocation5]  }
  0x17   :  { %362 = vmatpush1.msra.mxu1 %v49_v7  ;;  %85 = vmatprep.subr.mxu0 %v48_v8  ;;  %v55_v25 = vld [vmem:[%s665_s3] sm:$0x3]  ;;  %s302_s3 = sshll.u32 %s448_s1, 4  ;;  %s303_s3 = int_to_ptr.vmem [resolvable:$true] %s302_s3 }
  0x18   :  { %355 = vmatprep.subr.mxu1 %v48_v8  ;;  %86 = vmatpush1.msra.mxu0 %v47_v9  ;;  %v144_v28 = vrot.slane %v55_v25, %v143_v24  ;;  %v148_v29 = vrot.slane %v55_v25, %v147_v26  ;;  %s397_s8 = scalar_lea.vmem %s303_s3, 512  ;;  %p402_p6 = scmp.lt.s32.totalorder %s303_s3, %s303_s3 }
  0x19   :  { %363 = vmatpush1.msra.mxu1 %v47_v9  ;;  %87 = vmatprep.subr.mxu0 %v46_v10  ;;  %p398_p5 = scmp.ne.s32.totalorder %s303_s3, %s397_s8  ;;  %p403_p7 = scmp.lt.s32.totalorder %s397_s8, %s397_s8 }
  0x1a   :  { %356 = vmatprep.subr.mxu1 %v46_v10  ;;  %88 = vmatpush1.msra.mxu0 %v45_v11  ;;  %v449_v10 = vmov 1.0  }
  0x1b   :  { %364 = vmatpush1.msra.mxu1 %v45_v11  ;;  %89 = vmatprep.subr.mxu0 %v44_v12  ;;  %p404_p8 = por %p403_p7, %p402_p6 }
  0x1c   :  { %357 = vmatprep.subr.mxu1 %v44_v12  ;;  %90 = vmatpush1.msra.mxu0 %v43_v13 }
  0x1d   :  { %365 = vmatpush1.msra.mxu1 %v43_v13  ;;  %91 = vmatprep.subr.mxu0 %v42_v14  ;;  %p405_p9 = pnand %p404_p8, %p398_p5 }
  0x1e   :  { %358 = vmatprep.subr.mxu1 %v42_v14  ;;  %92 = vmatpush1.msra.mxu0 %v41_v15 }
  0x1f   :  { %366 = vmatpush1.msra.mxu1 %v41_v15  ;;  %93 = vmatprep.subr.mxu0 %v40_v16 }
  0x20   :  { %359 = vmatprep.subr.mxu1 %v40_v16  ;;  %94 = vmatpush1.msra.mxu0 %v39_v17 }
  0x21   :  { %367 = vmatpush1.msra.mxu1 %v39_v17  ;;  %330 = vmatmul.mubr.msk.f32.vlgmr.msra.gmra.mxu0 %vm56_vm0, %v35_v18 }
  0x22   :  { %331 = vmatmul.mubr.msk.f32.vlgmr.msra.gmra.mxu1 %vm56_vm0, %v36_v19  ;;  %273 = vperm.xlu0 %376, %v37_v20  }
  0x26   :  { %278 = vperm.xlu0 %376, %v38_v21  }
  0x9d   :  { %v504_v27 = vpop.permute.xlu0 %273 }
  0xa1   :  { %v508_v40 = vpop.permute.xlu0 %278 }
  0xe1   :  { %v129_v30 = vpop.f32.mrf.mxu0 }
  0xe2   :  { %v135_v31 = vpop.f32.mrf.mxu1  ;;  %v151_v32 = vmul.f32 %v144_v28, %v129_v30 }
  0xe3   :  { %v153_v33 = vmul.f32 %v144_v28, %v135_v31  ;;  %v131_v34 = vpop.f32.mrf.mxu0 }
  0xe4   :  { %v137_v35 = vpop.f32.mrf.mxu1  ;;  %v506_v36 = vclamps-f32 %v151_v32, 1.0  ;;  %v152_v38 = vmul.f32 %v148_v29, %v131_v34 }
  0xe5   :  { %v334_v37 = vclamps-f32 %v153_v33, 1.0  ;;  %v154_v39 = vmul.f32 %v148_v29, %v137_v35 }
  0xe6   :  { %v163_v41 = vmul.f32 %v506_v36, %v506_v36  ;;  %v512_v42 = vclamps-f32 %v152_v38, 1.0  ;;  %v281_v5 = vmul.f32 %v506_v36, %v504_v27  ;;  %vm183_vm15 = vcmp.le.f32.partialorder %v506_v36, 0.70710677 }
  0xe7   :  { %v335_v43 = vclamps-f32 %v154_v39, 1.0  ;;  %v165_v44 = vmul.f32 %v334_v37, %v334_v37  ;;  %vm185_vm1 = vcmp.le.f32.partialorder %v334_v37, 0.70710677  ;;  %vm189_vm2 = vcmp.le.f32.partialorder %v334_v37, 1.7948966e-09 }
  0xe8   :  { %vm193_vm3 = vcmp.le.f32.partialorder %v334_v37, -0.70710677  ;;  %v283_v45 = vmul.f32 %v334_v37, %v508_v40  ;;  %v517_v46 = vmul.f32 %v512_v42, %v512_v42  ;;  %vm197_vm7 = vcmp.le.f32.partialorder %v334_v37, -1.0  ;;  %vm521_vm9 = vmxor %vm185_vm1, %vm189_vm2  ;;  %285 = vst [vmem:[#allocation5] sm:$0xff] %v281_v5 }
  0xe9   :  { %v166_v47 = vmul.f32 %v335_v43, %v335_v43  ;;  %v169_v48 = vmul.f32 8.0, %v165_v44  ;;  %vm186_vm4 = vcmp.le.f32.partialorder %v335_v43, 0.70710677  ;;  %vm190_vm5 = vcmp.le.f32.partialorder %v335_v43, 1.7948966e-09  ;;  %vm541_vm11 = vmxor %vm193_vm3, %vm197_vm7 }
  0xea   :  { %vm194_vm6 = vcmp.le.f32.partialorder %v335_v43, -0.70710677  ;;  %vm198_vm8 = vcmp.le.f32.partialorder %v335_v43, -1.0  ;;  %287 = vst [vmem:[#allocation5 + $0x10] sm:$0xff] %v283_v45  ;;  %v338_v52 = vsel %vm185_vm1, 1.0, %v446_v0  ;;  %v339_v53 = vsel %vm186_vm4, 1.0, %v446_v0  ;;  %vm528_vm10 = vmxor %vm186_vm4, %vm190_vm5 }
  0xeb   :  { %v170_v50 = vmul.f32 8.0, %v166_v47  ;;  %v173_v51 = vmul.f32 %v169_v48, %v165_v44  ;;  %v342_v55 = vsel %vm189_vm2, 1.0, %v446_v0  ;;  %v343_v56 = vsel %vm190_vm5, 1.0, %v446_v0  ;;  %vm547_vm12 = vmxor %vm194_vm6, %vm198_vm8 }
  0xec   :  { %v346_v57 = vsel %vm193_vm3, 1.0, %v446_v0  ;;  %v347_v58 = vsel %vm194_vm6, 1.0, %v446_v0  ;;  %v217_v62 = vadd.f32 %v342_v55, %v338_v52  ;;  %v218_v63 = vadd.f32 %v343_v56, %v339_v53  ;;  %vm253_vm13 = vmxor %vm521_vm9, %vm541_vm11 }
  0xed   :  { %v174_v60 = vmul.f32 %v170_v50, %v166_v47  ;;  %v177_v61 = vsub.f32 %v173_v51, %v169_v48  ;;  %v350_v2 = vsel %vm197_vm7, 1.0, %v446_v0  ;;  %v351_v3 = vsel %vm198_vm8, 1.0, %v446_v0  ;;  %vm254_vm14 = vmxor %vm528_vm10, %vm547_vm12 }
  0xee   :  { %v284_v4 = vmul.f32 %v335_v43, %v508_v40  ;;  %v229_v8 = vadd.f32 %v346_v57, %v217_v62  ;;  %v230_v9 = vadd.f32 %v347_v58, %v218_v63  ;;  %v257_v11 = vsel %vm253_vm13, -1.0, %v449_v10 }
  0xef   :  { %v178_v6 = vsub.f32 %v174_v60, %v170_v50  ;;  %v181_v7 = vadd.f32 1.0, %v177_v61  ;;  %v258_v12 = vsel %vm254_vm14, -1.0, %v449_v10  ;;  %v282_v13 = vmul.f32 %v512_v42, %v504_v27 }
  0xf0   :  { %288 = vst [vmem:[#allocation5 + $0x18] sm:$0xff] %v284_v4  ;;  %v167_v14 = vmul.f32 8.0, %v163_v41  ;;  %v241_v16 = vadd.f32 %v350_v2, %v229_v8  ;;  %v242_v17 = vadd.f32 %v351_v3, %v230_v9  ;;  %v168_v19 = vmul.f32 8.0, %v517_v46 }
  0xf1   :  { %v182_v15 = vadd.f32 1.0, %v178_v6  ;;  %v261_v18 = vmul.f32 %v257_v11, %v181_v7  ;;  %286 = vst [vmem:[#allocation5 + $0x8] sm:$0xff] %v282_v13  ;;  %vm184_vm0 = vcmp.le.f32.partialorder %v512_v42, 0.70710677 }
  0xf2   :  { %v171_v20 = vmul.f32 %v167_v14, %v163_v41  ;;  %v265_v22 = vmul.f32 2.0, %v241_v16  ;;  %v266_v23 = vmul.f32 2.0, %v242_v17 }
  0xf3   :  { %v262_v21 = vmul.f32 %v258_v12, %v182_v15 }
  0xf4   :  { %408 = shalt.err (!%p405_p9)
}
  0xf5   :  { %308 = dma.vmem_to_hbm [thread:$0]  %s303_s3, 512, %s666_s4, [#allocation4], %s444_s21, %s444_s21, %s445_s22   ;;  %vm187_vm1 = vcmp.le.f32.partialorder %v506_v36, 1.7948966e-09  ;;  %v172_v24 = vmul.f32 %v168_v19, %v517_v46  ;;  %v175_v25 = vsub.f32 %v171_v20, %v167_v14  ;;  %vm188_vm2 = vcmp.le.f32.partialorder %v512_v42, 1.7948966e-09 }
  0xf6   :  { %vm191_vm3 = vcmp.le.f32.partialorder %v506_v36, -0.70710677  ;;  %vm587_vm4 = vmxor %vm183_vm15, %vm187_vm1  ;;  %v269_v28 = vsub.f32 %v261_v18, %v265_v22  ;;  %v270_v29 = vsub.f32 %v262_v21, %v266_v23  ;;  %vm192_vm5 = vcmp.le.f32.partialorder %v512_v42, -0.70710677  ;;  %s450_s4 = smov [#allocation6]  }
  0xf7   :  { %vm195_vm6 = vcmp.le.f32.partialorder %v506_v36, -1.0  ;;  %vm597_vm7 = vmxor %vm184_vm0, %vm188_vm2  ;;  %v176_v31 = vsub.f32 %v172_v24, %v168_v19  ;;  %vm196_vm8 = vcmp.le.f32.partialorder %v512_v42, -1.0  ;;  %v336_v32 = vsel %vm183_vm15, 1.0, %v446_v0  ;;  %s314_s11 = sshll.u32 %s450_s4, 4  ;;  %s315_s11 = int_to_ptr.vmem [resolvable:$true] %s314_s11 }
  0xf8   :  { %vm609_vm9 = vmxor %vm191_vm3, %vm195_vm6  ;;  %v291_v34 = vmul.f32 %v508_v40, %v269_v28  ;;  %v292_v35 = vmul.f32 %v508_v40, %v270_v29  ;;  %v337_v37 = vsel %vm184_vm0, 1.0, %v446_v0  ;;  %v340_v38 = vsel %vm187_vm1, 1.0, %v446_v0  ;;  %s417_s12 = scalar_lea.vmem %s315_s11, 512  ;;  %p422_p11 = scmp.lt.s32.totalorder %s315_s11, %s315_s11 }
  0xf9   :  { %vm625_vm10 = vmxor %vm192_vm5, %vm196_vm8  ;;  %v179_v41 = vadd.f32 1.0, %v175_v25  ;;  %v341_v40 = vsel %vm188_vm2, 1.0, %v446_v0  ;;  %v215_v43 = vadd.f32 %v340_v38, %v336_v32  ;;  %v180_v44 = vadd.f32 1.0, %v176_v31  ;;  %p418_p10 = scmp.ne.s32.totalorder %s315_s11, %s417_s12  ;;  %p423_p12 = scmp.lt.s32.totalorder %s417_s12, %s417_s12 }
  0xfa   :  { %vm251_vm11 = vmxor %vm587_vm4, %vm609_vm9  ;;  %295 = vst [vmem:[#allocation6 + $0x10] sm:$0xff] %v291_v34  ;;  %v216_v45 = vadd.f32 %v341_v40, %v337_v37  ;;  %v344_v46 = vsel %vm191_vm3, 1.0, %v446_v0  ;;  %v345_v47 = vsel %vm192_vm5, 1.0, %v446_v0  ;;  %v348_v50 = vsel %vm195_vm6, 1.0, %v446_v0 }
  0xfb   :  { %296 = vst [vmem:[#allocation6 + $0x18] sm:$0xff] %v292_v35  ;;  %vm252_vm12 = vmxor %vm597_vm7, %vm625_vm10  ;;  %v227_v48 = vadd.f32 %v344_v46, %v215_v43  ;;  %v255_v51 = vsel %vm251_vm11, -1.0, %v449_v10  ;;  %v349_v52 = vsel %vm196_vm8, 1.0, %v446_v0  ;;  %p424_p13 = por %p423_p12, %p422_p11 }
  0xfc   :  { %v228_v49 = vadd.f32 %v345_v47, %v216_v45  ;;  %v256_v54 = vsel %vm252_vm12, -1.0, %v449_v10  ;;  %v259_v55 = vmul.f32 %v255_v51, %v179_v41 }
  0xfd   :  { %v239_v53 = vadd.f32 %v348_v50, %v227_v48  ;;  %v260_v57 = vmul.f32 %v256_v54, %v180_v44  ;;  %p425_p0 = pnand %p424_p13, %p418_p10 }
  0xfe   :  { %v240_v56 = vadd.f32 %v349_v52, %v228_v49 }
  0xff   :  { %v263_v58 = vmul.f32 2.0, %v239_v53 }
 0x100   :  { %v264_v59 = vmul.f32 2.0, %v240_v56 }
 0x101   :  { %v267_v60 = vsub.f32 %v259_v55, %v263_v58 }
 0x102   :  { %v268_v61 = vsub.f32 %v260_v57, %v264_v59 }
 0x103   :  { %v289_v36 = vmul.f32 %v504_v27, %v267_v60 }
 0x104   :  { %v290_v62 = vmul.f32 %v504_v27, %v268_v61 }
 0x105   :  { %293 = vst [vmem:[#allocation6] sm:$0xff] %v289_v36 }
 0x106   :  { %294 = vst [vmem:[#allocation6 + $0x8] sm:$0xff] %v290_v62 }
 0x107   :  { %428 = shalt.err (!%p425_p0)
}
 0x108   :  { %320 = dma.vmem_to_hbm [thread:$0]  %s315_s11, 512, %s667_s5, [#allocation7], %s444_s21, %s444_s21, %s445_s22  }
 0x109   :  { %439 = dma.done.wait [#allocation4], 512  }
 0x10a   :  { %440 = vsyncadd [#allocation4], 4294966784 }
 0x10b   :  { %441 = dma.done.wait [#allocation7], 512  }
 0x10c   :  { %442 = vsyncadd [#allocation7], 4294966784 }
 0x10d   :  { %327 = vsyncpa [#allocation3], 1 }
 0x10e   :  { %328 = vsyncpa [#allocation4], 1 }
 0x10f   :  { %329 = vsyncpa [#allocation7], 1 }

</bundles_post_ra>
